<compile_context>
chip_gen: v6e
topology: v6e:2x2x1
jax: 0.10.0
libtpu: 0.0.40
codegen_flags: <defaults>
</compile_context>

<pallas_src>
import functools

import jax
import jax.numpy as jnp
import numpy as np
from jax.experimental import pallas as pl
from jax.experimental.pallas import tpu as pltpu

LANES = 128  # lane width: pad every feature/class dim to this


def _round_up(n, m):
    return ((n + m - 1) // m) * m


def _pad_to(a, shape, value=0.0):
    pads = [(0, s - d) for d, s in zip(a.shape, shape)]
    return jnp.pad(a, pads, constant_values=value)


def iris_mlp_kernel(x_ref, w1_ref, b1_ref, w2_ref, b2_ref, w3_ref, b3_ref, o_ref):
    # One [TB, 128] batch tile per grid step; all operands are lane-dense f32 tiles.
    x = x_ref[...]

    h1 = jnp.dot(x, w1_ref[...], preferred_element_type=jnp.float32) + b1_ref[...]
    h1 = jnp.maximum(h1, 0.0)

    h2 = jnp.dot(h1, w2_ref[...], preferred_element_type=jnp.float32) + b2_ref[...]
    h2 = jnp.maximum(h2, 0.0)

    # Padded class lanes carry a ~-1e30 bias -> exp underflows to exactly 0 below.
    logits = jnp.dot(h2, w3_ref[...], preferred_element_type=jnp.float32) + b3_ref[...]

    # Numerically stable softmax over the (padded) class lanes.
    m = jnp.max(logits, axis=1, keepdims=True)
    e = jnp.exp(logits - m)
    denom = jnp.sum(e, axis=1, keepdims=True)
    # EUP reciprocal instead of a VALU divide.
    o_ref[...] = e * pl.reciprocal(denom, approx=True)


@functools.partial(jax.jit, static_argnames=("block_b",))
def iris_classifier_forward(x, params, *, block_b=1024):
    """x: [B, 4] f32; params: (w1[4,16], b1[1,16], w2[16,8], b2[1,8], w3[8,3], b3[1,3])."""
    w1, b1, w2, b2, w3, b3 = params
    B, _ = x.shape
    out_dim = w3.shape[1]

    # Batch tile: multiple of 8 sublanes, capped at block_b rows; pad batch to a multiple.
    TB = min(block_b, _round_up(B, 8))
    B_pad = _round_up(B, TB)

    x_p = _pad_to(x.astype(jnp.float32), (B_pad, LANES))
    w1_p = _pad_to(w1.astype(jnp.float32), (LANES, LANES))
    b1_p = _pad_to(b1.astype(jnp.float32), (1, LANES))
    w2_p = _pad_to(w2.astype(jnp.float32), (LANES, LANES))
    b2_p = _pad_to(b2.astype(jnp.float32), (1, LANES))
    w3_p = _pad_to(w3.astype(jnp.float32), (LANES, LANES))
    # Pad class bias with a huge negative number so padded lanes vanish in softmax.
    b3_p = _pad_to(b3.astype(jnp.float32), (1, LANES), value=-1e30)

    grid = (B_pad // TB,)

    cost = pl.CostEstimate(
        flops=2 * B_pad * LANES * LANES * 3,          # three 128x128 matmuls per row tile
        transcendentals=B_pad * (LANES + 1),          # exp per lane + reciprocal per row
        bytes_accessed=(B_pad * LANES * 4) * 2        # x in + probs out
        + 3 * LANES * LANES * 4 + 3 * LANES * 4,      # resident weights/biases (once)
    )

    weight_spec = pl.BlockSpec((LANES, LANES), lambda i: (0, 0))
    bias_spec = pl.BlockSpec((1, LANES), lambda i: (0, 0))

    out_p = pl.pallas_call(
        iris_mlp_kernel,
        out_shape=jax.ShapeDtypeStruct((B_pad, LANES), jnp.float32),
        grid=grid,
        in_specs=[
            pl.BlockSpec((TB, LANES), lambda i: (i, 0)),  # x: blocked over batch
            weight_spec, bias_spec,                       # fc1 (VMEM-resident)
            weight_spec, bias_spec,                       # fc2
            weight_spec, bias_spec,                       # fc3
        ],
        out_specs=pl.BlockSpec((TB, LANES), lambda i: (i, 0)),
        compiler_params=pltpu.CompilerParams(
            dimension_semantics=("parallel",),            # shard batch across TCs on v7x
        ),
        cost_estimate=cost,
    )(x_p, w1_p, b1_p, w2_p, b2_p, w3_p, b3_p)

    # Slice away batch / class padding (lane-dense slab -> real [B, 3] probabilities).
    return out_p[:B, :out_dim]


def init_params(key, in_features=4, h1=16, h2=8, out=3):
    # Deterministic init mimicking PyTorch nn.Linear default:
    # U(-1/sqrt(fan_in), 1/sqrt(fan_in)) for both weights and biases.
    ks = jax.random.split(key, 6)

    def lin(kw, kb, fan_in, fan_out):
        bound = 1.0 / np.sqrt(fan_in)
        w = jax.random.uniform(kw, (fan_in, fan_out), jnp.float32, -bound, bound)
        b = jax.random.uniform(kb, (1, fan_out), jnp.float32, -bound, bound)
        return w, b

    w1, b1 = lin(ks[0], ks[1], in_features, h1)
    w2, b2 = lin(ks[2], ks[3], h1, h2)
    w3, b3 = lin(ks[4], ks[5], h2, out)
    return (w1, b1, w2, b2, w3, b3)


if __name__ == "__main__":
    key = jax.random.PRNGKey(0)
    k_x, k_p = jax.random.split(key)

    # Iris: 4 features. Small batch of 8, already "standardized".
    B, F = 8, 4
    x = jax.random.normal(k_x, (B, F), dtype=jnp.float32)
    params = init_params(k_p, in_features=F, h1=16, h2=8, out=3)

    probs = iris_classifier_forward(x, params)
    probs = jax.block_until_ready(probs)

    # Reference: plain-JAX forward of the same module.
    w1, b1, w2, b2, w3, b3 = params
    h1 = jnp.maximum(x @ w1 + b1, 0.0)
    h2 = jnp.maximum(h1 @ w2 + b2, 0.0)
    logits = h2 @ w3 + b3
    ref = jax.nn.softmax(logits, axis=1)

    assert probs.shape == (B, 3)
    # Tolerance loosened (vs 1e-5) to accommodate the EUP approx reciprocal.
    np.testing.assert_allclose(np.asarray(probs), np.asarray(ref), rtol=5e-3, atol=5e-3)
    np.testing.assert_allclose(np.asarray(probs.sum(axis=1)), np.ones(B), rtol=5e-3, atol=5e-3)

    print("KERNEL_OK")
</pallas_src>

<mosaic_0001>
module attributes {stable_mosaic.version = 11 : i64} {
  func.func @iris_mlp_kernel(%arg0: i32, %arg1: memref<8x128xf32, #tpu.memory_space<vmem>>, %arg2: memref<128x128xf32, #tpu.memory_space<vmem>>, %arg3: memref<1x128xf32, #tpu.memory_space<vmem>>, %arg4: memref<128x128xf32, #tpu.memory_space<vmem>>, %arg5: memref<1x128xf32, #tpu.memory_space<vmem>>, %arg6: memref<128x128xf32, #tpu.memory_space<vmem>>, %arg7: memref<1x128xf32, #tpu.memory_space<vmem>>, %arg8: memref<8x128xf32, #tpu.memory_space<vmem>>) attributes {dimension_semantics = [#tpu.dimension_semantics<parallel>], iteration_bounds = array<i64: 1>, scalar_prefetch = 0 : i64, scratch_operands = 0 : i64, tpu.core_type = #tpu.core_type<tc>, window_params = [{transform_indices = @transform_0, window_bounds = array<i64: 8, 128>}, {pipeline_mode = #tpu.pipeline_mode<synchronous>, transform_indices = @transform_1, window_bounds = array<i64: 128, 128>}, {pipeline_mode = #tpu.pipeline_mode<synchronous>, transform_indices = @transform_2, window_bounds = array<i64: 1, 128>}, {pipeline_mode = #tpu.pipeline_mode<synchronous>, transform_indices = @transform_3, window_bounds = array<i64: 128, 128>}, {pipeline_mode = #tpu.pipeline_mode<synchronous>, transform_indices = @transform_4, window_bounds = array<i64: 1, 128>}, {pipeline_mode = #tpu.pipeline_mode<synchronous>, transform_indices = @transform_5, window_bounds = array<i64: 128, 128>}, {pipeline_mode = #tpu.pipeline_mode<synchronous>, transform_indices = @transform_6, window_bounds = array<i64: 1, 128>}, {transform_indices = @transform_7, window_bounds = array<i64: 8, 128>}]} {
    %c0 = arith.constant 0 : index
    %c0_0 = arith.constant 0 : index
    %0 = vector.load %arg1[%c0, %c0_0] : memref<8x128xf32, #tpu.memory_space<vmem>>, vector<8x128xf32>
    %c0_1 = arith.constant 0 : index
    %c0_2 = arith.constant 0 : index
    %1 = vector.load %arg2[%c0_1, %c0_2] : memref<128x128xf32, #tpu.memory_space<vmem>>, vector<128x128xf32>
    %cst = arith.constant dense<0.000000e+00> : vector<8x128xf32>
    %2 = tpu.matmul %0, %1, %cst {dimension_numbers = #tpu.dot_dimension_numbers<[1], [0], [0], [1], [0, 0, 1, 1], [], []>} : vector<8x128xf32>, vector<128x128xf32>, vector<8x128xf32> -> vector<8x128xf32>
    %c0_3 = arith.constant 0 : index
    %c0_4 = arith.constant 0 : index
    %3 = vector.load %arg3[%c0_3, %c0_4] : memref<1x128xf32, #tpu.memory_space<vmem>>, vector<1x128xf32>
    %4 = vector.broadcast %3 : vector<1x128xf32> to vector<8x128xf32>
    %5 = arith.addf %2, %4 : vector<8x128xf32>
    %cst_5 = arith.constant 0.000000e+00 : f32
    %6 = vector.broadcast %cst_5 : f32 to vector<8x128xf32>
    %7 = arith.maximumf %5, %6 : vector<8x128xf32>
    %c0_6 = arith.constant 0 : index
    %c0_7 = arith.constant 0 : index
    %8 = vector.load %arg4[%c0_6, %c0_7] : memref<128x128xf32, #tpu.memory_space<vmem>>, vector<128x128xf32>
    %cst_8 = arith.constant dense<0.000000e+00> : vector<8x128xf32>
    %9 = tpu.matmul %7, %8, %cst_8 {dimension_numbers = #tpu.dot_dimension_numbers<[1], [0], [0], [1], [0, 0, 1, 1], [], []>} : vector<8x128xf32>, vector<128x128xf32>, vector<8x128xf32> -> vector<8x128xf32>
    %c0_9 = arith.constant 0 : index
    %c0_10 = arith.constant 0 : index
    %10 = vector.load %arg5[%c0_9, %c0_10] : memref<1x128xf32, #tpu.memory_space<vmem>>, vector<1x128xf32>
    %11 = vector.broadcast %10 : vector<1x128xf32> to vector<8x128xf32>
    %12 = arith.addf %9, %11 : vector<8x128xf32>
    %cst_11 = arith.constant 0.000000e+00 : f32
    %13 = vector.broadcast %cst_11 : f32 to vector<8x128xf32>
    %14 = arith.maximumf %12, %13 : vector<8x128xf32>
    %c0_12 = arith.constant 0 : index
    %c0_13 = arith.constant 0 : index
    %15 = vector.load %arg6[%c0_12, %c0_13] : memref<128x128xf32, #tpu.memory_space<vmem>>, vector<128x128xf32>
    %cst_14 = arith.constant dense<0.000000e+00> : vector<8x128xf32>
    %16 = tpu.matmul %14, %15, %cst_14 {dimension_numbers = #tpu.dot_dimension_numbers<[1], [0], [0], [1], [0, 0, 1, 1], [], []>} : vector<8x128xf32>, vector<128x128xf32>, vector<8x128xf32> -> vector<8x128xf32>
    %c0_15 = arith.constant 0 : index
    %c0_16 = arith.constant 0 : index
    %17 = vector.load %arg7[%c0_15, %c0_16] : memref<1x128xf32, #tpu.memory_space<vmem>>, vector<1x128xf32>
    %18 = vector.broadcast %17 : vector<1x128xf32> to vector<8x128xf32>
    %19 = arith.addf %16, %18 : vector<8x128xf32>
    %cst_17 = arith.constant dense<0xFF800000> : vector<8xf32>
    %20 = vector.multi_reduction <maximumf>, %19, %cst_17 [1] : vector<8x128xf32> to vector<8xf32>
    %21 = vector.shape_cast %20 : vector<8xf32> to vector<8x1xf32>
    %22 = vector.broadcast %21 : vector<8x1xf32> to vector<8x128xf32>
    %23 = arith.subf %19, %22 : vector<8x128xf32>
    %24 = math.exp %23 : vector<8x128xf32>
    %cst_18 = arith.constant dense<0.000000e+00> : vector<8xf32>
    %25 = vector.multi_reduction <add>, %24, %cst_18 [1] : vector<8x128xf32> to vector<8xf32>
    %26 = vector.shape_cast %25 : vector<8xf32> to vector<8x1xf32>
    %27 = tpu.reciprocal %26 {approx = true} : vector<8x1xf32> -> vector<8x1xf32>
    %28 = vector.broadcast %27 : vector<8x1xf32> to vector<8x128xf32>
    %29 = arith.mulf %24, %28 : vector<8x128xf32>
    %c0_19 = arith.constant 0 : index
    %c0_20 = arith.constant 0 : index
    %30 = vector.load %arg8[%c0_19, %c0_20] : memref<8x128xf32, #tpu.memory_space<vmem>>, vector<8x128xf32>
    tpu.vector_store %arg8[%c0_19, %c0_20], %29 {strides = array<i32>} : memref<8x128xf32, #tpu.memory_space<vmem>>, vector<8x128xf32>,
    return
  }
  func.func @transform_0(%arg0: i32) -> (i32, i32) {
    %c0_i32 = arith.constant 0 : i32
    %c0_i32_0 = arith.constant 0 : i32
    return %arg0, %c0_i32 : i32, i32
  }
  func.func @transform_1(%arg0: i32) -> (i32, i32) {
    %c0_i32 = arith.constant 0 : i32
    %c0_i32_0 = arith.constant 0 : i32
    %c0_i32_1 = arith.constant 0 : i32
    return %c0_i32, %c0_i32_0 : i32, i32
  }
  func.func @transform_2(%arg0: i32) -> (i32, i32) {
    %c0_i32 = arith.constant 0 : i32
    %c0_i32_0 = arith.constant 0 : i32
    %c0_i32_1 = arith.constant 0 : i32
    return %c0_i32, %c0_i32_0 : i32, i32
  }
  func.func @transform_3(%arg0: i32) -> (i32, i32) {
    %c0_i32 = arith.constant 0 : i32
    %c0_i32_0 = arith.constant 0 : i32
    %c0_i32_1 = arith.constant 0 : i32
    return %c0_i32, %c0_i32_0 : i32, i32
  }
  func.func @transform_4(%arg0: i32) -> (i32, i32) {
    %c0_i32 = arith.constant 0 : i32
    %c0_i32_0 = arith.constant 0 : i32
    %c0_i32_1 = arith.constant 0 : i32
    return %c0_i32, %c0_i32_0 : i32, i32
  }
  func.func @transform_5(%arg0: i32) -> (i32, i32) {
    %c0_i32 = arith.constant 0 : i32
    %c0_i32_0 = arith.constant 0 : i32
    %c0_i32_1 = arith.constant 0 : i32
    return %c0_i32, %c0_i32_0 : i32, i32
  }
  func.func @transform_6(%arg0: i32) -> (i32, i32) {
    %c0_i32 = arith.constant 0 : i32
    %c0_i32_0 = arith.constant 0 : i32
    %c0_i32_1 = arith.constant 0 : i32
    return %c0_i32, %c0_i32_0 : i32, i32
  }
  func.func @transform_7(%arg0: i32) -> (i32, i32) {
    %c0_i32 = arith.constant 0 : i32
    %c0_i32_0 = arith.constant 0 : i32
    return %arg0, %c0_i32 : i32, i32
  }
}

</mosaic_0001>

<bundles_post_ra>
// kernel: iris_classifier_forward.1
= control target key start
LH: loop header
LB: loop body
LE: loop exit
PB: predicated region body
PF: predicated region fallthrough
CT: control target
= control target key end

     0   :  { %v487_v0 = vmov 0.0   ;;  %vm488_vm0 = vmmov 0   ;;  %s742_s1 = inlined_call_operand.vmem [shape: f32[128,128], index: 1, kind: input, shape index: {}]   ;;  %s743_s3 = inlined_call_operand.vmem [shape: f32[128,128], index: 3, kind: input, shape index: {}]   ;;  %s744_s0 = inlined_call_operand.vmem [shape: f32[8,128], index: 0, kind: input, shape index: {}]   ;;  %s745_s5 = inlined_call_operand.vmem [shape: f32[128,128], index: 5, kind: input, shape index: {}]   ;;  %s746_s2 = inlined_call_operand.vmem [shape: f32[1,128], index: 2, kind: input, shape index: {}]   ;;  %s747_s4 = inlined_call_operand.vmem [shape: f32[1,128], index: 4, kind: input, shape index: {}]   ;;  %s748_s6 = inlined_call_operand.vmem [shape: f32[1,128], index: 6, kind: input, shape index: {}]   ;;  %s749_s7 = inlined_call_operand.vmem [shape: f32[8,128], index: 7, kind: output, shape index: {}]  }
   0x1   :  { %376 = vmatprep.subr.mxu0 %v487_v0  ;;  %v42_v1 = vld [vmem:[%s742_s1 + $0x78] sm:$0xff]  ;;  %v41_v2 = vld [vmem:[%s742_s1 + $0x70] sm:$0xff]  ;;  %408 = vmatprep.mubr.msk.f32.mxu0 %vm488_vm0, %v487_v0  ;;  %v40_v3 = vld [vmem:[%s742_s1 + $0x68] sm:$0xff] }
   0x2   :  { %377 = vmatpush3.msra.mxu0 %v42_v1  ;;  %411 = vmatprep.subr.mxu1 %v487_v0  ;;  %v39_v4 = vld [vmem:[%s742_s1 + $0x60] sm:$0xff]  ;;  %v136_v5 = vld [vmem:[%s743_s3 + $0x78] sm:$0xff]  ;;  %v135_v7 = vld [vmem:[%s743_s3 + $0x70] sm:$0xff] }
   0x3   :  { %378 = vmatprep.subr.mxu0 %v487_v0  ;;  %443 = vmatprep.mubr.msk.f32.mxu1 %vm488_vm0, %v487_v0  ;;  %v38_v6 = vld [vmem:[%s742_s1 + $0x58] sm:$0xff]  ;;  %v134_v8 = vld [vmem:[%s743_s3 + $0x68] sm:$0xff]  ;;  %v37_v9 = vld [vmem:[%s742_s1 + $0x50] sm:$0xff] }
   0x4   :  { %379 = vmatpush3.msra.mxu0 %v41_v2  ;;  %412 = vmatpush3.msra.mxu1 %v136_v5  ;;  %v133_v10 = vld [vmem:[%s743_s3 + $0x60] sm:$0xff]  ;;  %v36_v11 = vld [vmem:[%s742_s1 + $0x48] sm:$0xff]  ;;  %v132_v12 = vld [vmem:[%s743_s3 + $0x58] sm:$0xff] }
   0x5   :  { %380 = vmatprep.subr.mxu0 %v487_v0  ;;  %413 = vmatprep.subr.mxu1 %v487_v0  ;;  %v35_v13 = vld [vmem:[%s742_s1 + $0x40] sm:$0xff]  ;;  %v131_v14 = vld [vmem:[%s743_s3 + $0x50] sm:$0xff]  ;;  %v34_v15 = vld [vmem:[%s742_s1 + $0x38] sm:$0xff] }
   0x6   :  { %381 = vmatpush3.msra.mxu0 %v40_v3  ;;  %414 = vmatpush3.msra.mxu1 %v135_v7  ;;  %v130_v16 = vld [vmem:[%s743_s3 + $0x48] sm:$0xff]  ;;  %v33_v17 = vld [vmem:[%s742_s1 + $0x30] sm:$0xff]  ;;  %v129_v18 = vld [vmem:[%s743_s3 + $0x40] sm:$0xff] }
   0x7   :  { %382 = vmatprep.subr.mxu0 %v487_v0  ;;  %415 = vmatprep.subr.mxu1 %v487_v0  ;;  %v32_v19 = vld [vmem:[%s742_s1 + $0x28] sm:$0xff]  ;;  %v128_v20 = vld [vmem:[%s743_s3 + $0x38] sm:$0xff]  ;;  %v31_v21 = vld [vmem:[%s742_s1 + $0x20] sm:$0xff] }
   0x8   :  { %383 = vmatpush3.msra.mxu0 %v39_v4  ;;  %416 = vmatpush3.msra.mxu1 %v134_v8  ;;  %v127_v22 = vld [vmem:[%s743_s3 + $0x30] sm:$0xff]  ;;  %v30_v23 = vld [vmem:[%s742_s1 + $0x18] sm:$0xff]  ;;  %v126_v24 = vld [vmem:[%s743_s3 + $0x28] sm:$0xff] }
   0x9   :  { %384 = vmatprep.subr.mxu0 %v487_v0  ;;  %417 = vmatprep.subr.mxu1 %v487_v0  ;;  %v29_v25 = vld [vmem:[%s742_s1 + $0x10] sm:$0xff]  ;;  %v125_v26 = vld [vmem:[%s743_s3 + $0x20] sm:$0xff]  ;;  %v28_v27 = vld [vmem:[%s742_s1 + $0x8] sm:$0xff] }
   0xa   :  { %385 = vmatpush3.msra.mxu0 %v38_v6  ;;  %418 = vmatpush3.msra.mxu1 %v133_v10  ;;  %v124_v28 = vld [vmem:[%s743_s3 + $0x18] sm:$0xff]  ;;  %v27_v29 = vld [vmem:[%s742_s1] sm:$0xff]  ;;  %v123_v31 = vld [vmem:[%s743_s3 + $0x10] sm:$0xff] }
   0xb   :  { %386 = vmatprep.subr.mxu0 %v487_v0  ;;  %419 = vmatprep.subr.mxu1 %v487_v0  ;;  %v26_v30 = vld [vmem:[%s744_s0] sm:$0xff]  ;;  %v122_v32 = vld [vmem:[%s743_s3 + $0x8] sm:$0xff]  ;;  %v230_v34 = vld [vmem:[%s745_s5 + $0x78] sm:$0xff] }
   0xc   :  { %387 = vmatpush3.msra.mxu0 %v37_v9  ;;  %420 = vmatpush3.msra.mxu1 %v132_v12  ;;  %v121_v33 = vld [vmem:[%s743_s3] sm:$0xff]  ;;  %v229_v35 = vld [vmem:[%s745_s5 + $0x70] sm:$0xff]  ;;  %v228_v36 = vld [vmem:[%s745_s5 + $0x68] sm:$0xff] }
   0xd   :  { %388 = vmatprep.subr.mxu0 %v487_v0  ;;  %421 = vmatprep.subr.mxu1 %v487_v0  ;;  %v227_v37 = vld [vmem:[%s745_s5 + $0x60] sm:$0xff]  ;;  %v226_v38 = vld [vmem:[%s745_s5 + $0x58] sm:$0xff]  ;;  %v225_v39 = vld [vmem:[%s745_s5 + $0x50] sm:$0xff] }
   0xe   :  { %389 = vmatpush3.msra.mxu0 %v36_v11  ;;  %422 = vmatpush3.msra.mxu1 %v131_v14  ;;  %v224_v40 = vld [vmem:[%s745_s5 + $0x48] sm:$0xff]  ;;  %v223_v41 = vld [vmem:[%s745_s5 + $0x40] sm:$0xff]  ;;  %v222_v42 = vld [vmem:[%s745_s5 + $0x38] sm:$0xff] }
   0xf   :  { %390 = vmatprep.subr.mxu0 %v487_v0  ;;  %423 = vmatprep.subr.mxu1 %v487_v0  ;;  %v221_v43 = vld [vmem:[%s745_s5 + $0x30] sm:$0xff]  ;;  %v220_v44 = vld [vmem:[%s745_s5 + $0x28] sm:$0xff]  ;;  %v219_v45 = vld [vmem:[%s745_s5 + $0x20] sm:$0xff] }
  0x10   :  { %391 = vmatpush3.msra.mxu0 %v35_v13  ;;  %424 = vmatpush3.msra.mxu1 %v130_v16  ;;  %v218_v46 = vld [vmem:[%s745_s5 + $0x18] sm:$0xff]  ;;  %v322_v47 = vld [vmem:[%s746_s2] ss:$0 sm:$0xff]  ;;  %v217_v52 = vld [vmem:[%s745_s5 + $0x10] sm:$0xff] }
  0x11   :  { %392 = vmatprep.subr.mxu0 %v487_v0  ;;  %425 = vmatprep.subr.mxu1 %v487_v0  ;;  %v216_v53 = vld [vmem:[%s745_s5 + $0x8] sm:$0xff]  ;;  %v215_v54 = vld [vmem:[%s745_s5] sm:$0xff] }
  0x12   :  { %393 = vmatpush3.msra.mxu0 %v34_v15  ;;  %426 = vmatpush3.msra.mxu1 %v129_v18  ;;  %v323_v55 = vld [vmem:[%s747_s4] ss:$0 sm:$0xff] }
  0x13   :  { %394 = vmatprep.subr.mxu0 %v487_v0  ;;  %427 = vmatprep.subr.mxu1 %v487_v0  ;;  %v324_v60 = vld [vmem:[%s748_s6] ss:$0 sm:$0xff] }
  0x14   :  { %395 = vmatpush3.msra.mxu0 %v33_v17  ;;  %428 = vmatpush3.msra.mxu1 %v128_v20 }
  0x15   :  { %396 = vmatprep.subr.mxu0 %v487_v0  ;;  %429 = vmatprep.subr.mxu1 %v487_v0 }
  0x16   :  { %397 = vmatpush3.msra.mxu0 %v32_v19  ;;  %430 = vmatpush3.msra.mxu1 %v127_v22 }
  0x17   :  { %398 = vmatprep.subr.mxu0 %v487_v0  ;;  %431 = vmatprep.subr.mxu1 %v487_v0 }
  0x18   :  { %399 = vmatpush3.msra.mxu0 %v31_v21  ;;  %432 = vmatpush3.msra.mxu1 %v126_v24 }
  0x19   :  { %400 = vmatprep.subr.mxu0 %v487_v0  ;;  %433 = vmatprep.subr.mxu1 %v487_v0 }
  0x1a   :  { %401 = vmatpush3.msra.mxu0 %v30_v23  ;;  %434 = vmatpush3.msra.mxu1 %v125_v26 }
  0x1b   :  { %402 = vmatprep.subr.mxu0 %v487_v0  ;;  %435 = vmatprep.subr.mxu1 %v487_v0 }
  0x1c   :  { %403 = vmatpush3.msra.mxu0 %v29_v25  ;;  %436 = vmatpush3.msra.mxu1 %v124_v28 }
  0x1d   :  { %404 = vmatprep.subr.mxu0 %v487_v0  ;;  %437 = vmatprep.subr.mxu1 %v487_v0 }
  0x1e   :  { %405 = vmatpush3.msra.mxu0 %v28_v27  ;;  %438 = vmatpush3.msra.mxu1 %v123_v31 }
  0x1f   :  { %406 = vmatprep.subr.mxu0 %v487_v0  ;;  %439 = vmatprep.subr.mxu1 %v487_v0 }
  0x20   :  { %407 = vmatpush3.msra.mxu0 %v27_v29  ;;  %440 = vmatpush3.msra.mxu1 %v122_v32 }
  0x21   :  { %409 = vmatmul.mubr.f32.vlgmr.msra.gmra.mxu0 %v26_v30  ;;  %446 = vmatprep.subr.mxu0 %v487_v0 }
  0x22   :  { %478 = vmatprep.mubr.msk.f32.mxu0 %vm488_vm0, %v487_v0  ;;  %441 = vmatprep.subr.mxu1 %v487_v0 }
  0x23   :  { %442 = vmatpush3.msra.mxu1 %v121_v33  ;;  %447 = vmatpush3.msra.mxu0 %v230_v34 }
  0x24   :  { %448 = vmatprep.subr.mxu0 %v487_v0 }
  0x25   :  { %449 = vmatpush3.msra.mxu0 %v229_v35 }
  0x26   :  { %450 = vmatprep.subr.mxu0 %v487_v0 }
  0x27   :  { %451 = vmatpush3.msra.mxu0 %v228_v36 }
  0x28   :  { %452 = vmatprep.subr.mxu0 %v487_v0 }
  0x29   :  { %453 = vmatpush3.msra.mxu0 %v227_v37 }
  0x2a   :  { %454 = vmatprep.subr.mxu0 %v487_v0 }
  0x2b   :  { %455 = vmatpush3.msra.mxu0 %v226_v38 }
  0x2c   :  { %456 = vmatprep.subr.mxu0 %v487_v0 }
  0x2d   :  { %457 = vmatpush3.msra.mxu0 %v225_v39 }
  0x2e   :  { %458 = vmatprep.subr.mxu0 %v487_v0 }
  0x2f   :  { %459 = vmatpush3.msra.mxu0 %v224_v40 }
  0x30   :  { %460 = vmatprep.subr.mxu0 %v487_v0 }
  0x31   :  { %461 = vmatpush3.msra.mxu0 %v223_v41 }
  0x32   :  { %462 = vmatprep.subr.mxu0 %v487_v0 }
  0x33   :  { %463 = vmatpush3.msra.mxu0 %v222_v42 }
  0x34   :  { %464 = vmatprep.subr.mxu0 %v487_v0 }
  0x35   :  { %465 = vmatpush3.msra.mxu0 %v221_v43 }
  0x36   :  { %466 = vmatprep.subr.mxu0 %v487_v0 }
  0x37   :  { %467 = vmatpush3.msra.mxu0 %v220_v44 }
  0x38   :  { %468 = vmatprep.subr.mxu0 %v487_v0 }
  0x39   :  { %469 = vmatpush3.msra.mxu0 %v219_v45 }
  0x3a   :  { %470 = vmatprep.subr.mxu0 %v487_v0 }
  0x3b   :  { %471 = vmatpush3.msra.mxu0 %v218_v46 }
  0x3c   :  { %472 = vmatprep.subr.mxu0 %v487_v0 }
  0x3d   :  { %473 = vmatpush3.msra.mxu0 %v217_v52 }
  0x3e   :  { %474 = vmatprep.subr.mxu0 %v487_v0 }
  0x3f   :  { %475 = vmatpush3.msra.mxu0 %v216_v53 }
  0x40   :  { %476 = vmatprep.subr.mxu0 %v487_v0 }
  0x41   :  { %477 = vmatpush3.msra.mxu0 %v215_v54 }
  0xe1   :  { %v116_v48 = vpop.f32.mrf.mxu0 }
  0xe2   :  { %v117_v49 = vadd.f32 %v322_v47, %v116_v48 }
  0xe3   :  { %v410_v50 = vpop.f32.mrf.mxu0 }
  0xe4   :  { %v120_v51 = vmax.f32 %v117_v49, 0.0 }
  0xe6   :  { %444 = vmatmul.mubr.f32.vlgmr.msra.gmra.mxu1 %v120_v51 }
 0x1a6   :  { %v210_v56 = vpop.f32.mrf.mxu1 }
 0x1a7   :  { %v211_v57 = vadd.f32 %v323_v55, %v210_v56 }
 0x1a8   :  { %v445_v58 = vpop.f32.mrf.mxu1 }
 0x1a9   :  { %v214_v59 = vmax.f32 %v211_v57, 0.0 }
 0x1ab   :  { %479 = vmatmul.mubr.f32.vlgmr.msra.gmra.mxu0 %v214_v59 }
 0x26b   :  { %v304_v61 = vpop.f32.mrf.mxu0 }
 0x26c   :  { %v305_v62 = vadd.f32 %v324_v60, %v304_v61 }
 0x26d   :  { %v480_v63 = vpop.f32.mrf.mxu0 }
 0x26e   :  { %308 = vmax.xlane.f32.xlu0 %v305_v62 }
 0x2f7   :  { %v309_v0 = vpop.xlane.xlu0 %308 }
 0x2f8   :  { %v310_v1 = vsub.f32 %v305_v62, %v309_v0 }
 0x2fa   :  { %v311_v2 = vmul.f32 1.442695, %v310_v1 }
 0x2fc   :  { %483 = vpow2.f32 %v311_v2 }
 0x309   :  { %v484_v3 = vpop.eup %483 }
 0x30a   :  { %313 = vadd.xlane.f32.xlu0 %v484_v3 }
 0x393   :  { %v314_v4 = vpop.xlane.xlu0 %313 }
 0x394   :  { %485 = vrcp.f32 %v314_v4 }
 0x3a1   :  { %v486_v5 = vpop.eup %485 }
 0x3a2   :  { %v316_v6 = vmul.f32 %v486_v5, %v484_v3 }
 0x3a4   :  { %317 = vst [vmem:[%s749_s7] sm:$0xff] %v316_v6 }

</bundles_post_ra>
